<compile_context>
chip_gen: v5e
topology: v5e:2x2
jax: 0.10.0
libtpu: 0.0.40
codegen_flags: <defaults>
</compile_context>

<pallas_src>
import numpy as np
import jax
import jax.numpy as jnp
from jax.experimental import pallas as pl
from jax.experimental.pallas import tpu as pltpu


def _interp_matrix(size_in, size_out):
    """Bilinear (align_corners=True) interpolation matrix, shape (size_out, size_in)."""
    pos = np.arange(size_out, dtype=np.float64) * (size_in - 1) / (size_out - 1)
    i0 = np.floor(pos).astype(np.int64)
    i1 = np.minimum(i0 + 1, size_in - 1)
    f = (pos - i0).astype(np.float32)
    m = np.zeros((size_out, size_in), np.float32)
    m[np.arange(size_out), i0] += 1.0 - f
    m[np.arange(size_out), i1] += f
    return m


def _conv_band_matrix(w_oihw, w_dim):
    """3x3 'same' conv along W folded into a banded matmul weight.

    Returns (3*w_dim*Cin, w_dim*Cout).  For kernel row dy, the (w_dim*Cin, w_dim*Cout)
    block maps a lane-flat (w-major, c-minor) input row at image row h+dy-1 to the
    lane-flat output row; the horizontal shift and zero-padding boundary are folded in.
    """
    w = np.asarray(w_oihw, np.float32)                     # (Cout, Cin, 3, 3)
    co, ci = w.shape[0], w.shape[1]
    b = np.zeros((3, w_dim * ci, w_dim * co), np.float32)
    for dy in range(3):
        for dx in range(3):
            k = w[:, :, dy, dx].T                          # (Cin, Cout)
            for wo in range(w_dim):
                wi = wo + dx - 1
                if 0 <= wi < w_dim:
                    b[dy, wi * ci:(wi + 1) * ci, wo * co:(wo + 1) * co] = k
    return b.reshape(3 * w_dim * ci, w_dim * co)


def _conv1_band_matrix(w_oihw, w_dim, c2):
    """Like _conv_band_matrix but the LHS lanes are [x2 half | upsampled-x1 half]
    (each half lane-flat over (w, c2)), so the channel concat never needs to be
    interleaved per pixel inside the kernel."""
    w = np.asarray(w_oihw, np.float32)                     # (Cout, 2*c2, 3, 3)
    co = w.shape[0]
    half = w_dim * c2
    b = np.zeros((3, 2 * half, w_dim * co), np.float32)
    for dy in range(3):
        for dx in range(3):
            ka = w[:, :c2, dy, dx].T                       # x2 channels   (c2, Cout)
            kb = w[:, c2:, dy, dx].T                       # up(x1) channels
            for wo in range(w_dim):
                wi = wo + dx - 1
                if 0 <= wi < w_dim:
                    b[dy, wi * c2:(wi + 1) * c2, wo * co:(wo + 1) * co] = ka
                    b[dy, half + wi * c2:half + (wi + 1) * c2, wo * co:(wo + 1) * co] = kb
    return b.reshape(3 * 2 * half, w_dim * co)


def _make_kernel(H2, slope=0.01):   # nn.LeakyReLU default slope
    def kernel(x1_ref, x2_ref, m1_ref, uh_ref, bup_ref,
               w1b_ref, s1_ref, t1_ref, w2b_ref, s2_ref, t2_ref, o_ref):
        # ---- conv1x1 + bilinear W-upsample (align_corners=True), folded into one matmul
        p = jnp.dot(x1_ref[...], m1_ref[...],
                    preferred_element_type=jnp.float32)                       # (H1, W2*C2)
        # ---- bilinear H-upsample + conv1x1 bias (interp rows sum to 1, so bias commutes)
        u = jnp.dot(uh_ref[...], p,
                    preferred_element_type=jnp.float32) + bup_ref[...]        # (H2, W2*C2)

        # ---- channel concat [x2, up(x1)] kept as a simple lane concat [x2 half | up half];
        #      the per-pixel channel interleave is folded into w1b.
        cat = jnp.concatenate([x2_ref[...], u], axis=-1)                      # (H2, W2*Cc)

        def conv3x3(x, wband_ref):
            # zero-pad rows (H halo), lane-concat 3 row-shifted views, single MXU matmul.
            z = jnp.zeros((1, x.shape[1]), jnp.float32)
            xp = jnp.concatenate([z, x, z], axis=0)                           # (H2+2, L)
            lhs = jnp.concatenate([xp[0:H2], xp[1:H2 + 1], xp[2:H2 + 2]],
                                  axis=-1).astype(jnp.bfloat16)               # (H2, 3*L)
            return jnp.dot(lhs, wband_ref[...],
                           preferred_element_type=jnp.float32)                # (H2, W2*Cout)

        # ---- conv1 3x3 + folded bias/BN (eval) + LeakyReLU
        y = conv3x3(cat, w1b_ref) * s1_ref[...] + t1_ref[...]
        y = jnp.maximum(y, slope * y)
        # Dropout: identity in inference mode.
        # TODO(synk): training-mode BatchNorm (batch stats) and Dropout RNG not implemented.

        # ---- conv2 3x3 + folded bias/BN + LeakyReLU
        y2 = conv3x3(y, w2b_ref) * s2_ref[...] + t2_ref[...]
        y2 = jnp.maximum(y2, slope * y2)

        o_ref[...] = y2                                                       # lane-dense (H2, W2*Cout)

    return kernel


def up_block_forward(x1_nchw, x2_nchw, params):
    N, C1, H1, W1 = x1_nchw.shape
    _, C2, H2, W2 = x2_nchw.shape
    assert H2 == 2 * H1 and W2 == 2 * W1
    Cout = params["w1"].shape[0]
    Cc = 2 * C2
    eps = 1e-5

    # Fold conv bias + eval-mode BatchNorm into per-channel scale/shift, lane-tiled over W.
    s1 = params["gamma1"] / jnp.sqrt(params["rv1"] + eps)
    t1 = params["beta1"] + s1 * (params["b1"] - params["rm1"])
    s2 = params["gamma2"] / jnp.sqrt(params["rv2"] + eps)
    t2 = params["beta2"] + s2 * (params["b2"] - params["rm2"])
    s1f = jnp.tile(s1, W2).reshape(1, W2 * Cout).astype(jnp.float32)
    t1f = jnp.tile(t1, W2).reshape(1, W2 * Cout).astype(jnp.float32)
    s2f = jnp.tile(s2, W2).reshape(1, W2 * Cout).astype(jnp.float32)
    t2f = jnp.tile(t2, W2).reshape(1, W2 * Cout).astype(jnp.float32)

    # NCHW -> lane-flat NHWC: (N, H, W*C) so the minor (lane) dim is W*C dense.
    x1f = jnp.transpose(x1_nchw, (0, 2, 3, 1)).reshape(N, H1, W1 * C1).astype(jnp.float32)
    x2f = jnp.transpose(x2_nchw, (0, 2, 3, 1)).reshape(N, H2, W2 * C2).astype(jnp.float32)

    # conv1x1 weight folded with the bilinear W-upsample matrix: kron(Uw^T, Wup).
    w_up = np.asarray(params["w_up"], np.float32).reshape(C2, C1).T           # (C1, C2)
    uw = _interp_matrix(W1, W2)                                               # (W2, W1)
    m1 = jnp.asarray(np.kron(uw.T, w_up))                                     # (W1*C1, W2*C2)
    uh = jnp.asarray(_interp_matrix(H1, H2))                                  # (H2, H1)
    bupf = jnp.asarray(np.tile(np.asarray(params["b_up"], np.float32), W2).reshape(1, W2 * C2))

    # 3x3 convs as banded matmul weights (shift + W zero-padding + concat folded in), bf16 MXU.
    w1b = jnp.asarray(_conv1_band_matrix(params["w1"], W2, C2)).astype(jnp.bfloat16)  # (3*W2*Cc, W2*Cout)
    w2b = jnp.asarray(_conv_band_matrix(params["w2"], W2)).astype(jnp.bfloat16)       # (3*W2*Cout, W2*Cout)

    kernel = _make_kernel(H2)

    def rep(shape):
        nd = len(shape)
        return pl.BlockSpec(shape, lambda n, _nd=nd: (0,) * _nd)

    flops = int(2 * N * (H1 * (W1 * C1) * (W2 * C2)              # conv1x1 + W-upsample
                         + H2 * H1 * (W2 * C2)                   # H-upsample
                         + H2 * (3 * W2 * Cc) * (W2 * Cout)      # conv1 (banded)
                         + H2 * (3 * W2 * Cout) * (W2 * Cout)))  # conv2 (banded)
    bytes_accessed = int(4 * (x1f.size + x2f.size + m1.size + uh.size + bupf.size
                              + s1f.size + t1f.size + s2f.size + t2f.size)
                         + 2 * (w1b.size + w2b.size)
                         + 4 * N * H2 * W2 * Cout)

    out = pl.pallas_call(
        kernel,
        out_shape=jax.ShapeDtypeStruct((N, H2, W2 * Cout), jnp.float32),
        grid=(N,),
        in_specs=[
            pl.BlockSpec((None, H1, W1 * C1), lambda n: (n, 0, 0)),
            pl.BlockSpec((None, H2, W2 * C2), lambda n: (n, 0, 0)),
            rep((W1 * C1, W2 * C2)),
            rep((H2, H1)),
            rep((1, W2 * C2)),
            rep((3 * W2 * Cc, W2 * Cout)), rep((1, W2 * Cout)), rep((1, W2 * Cout)),
            rep((3 * W2 * Cout, W2 * Cout)), rep((1, W2 * Cout)), rep((1, W2 * Cout)),
        ],
        out_specs=pl.BlockSpec((None, H2, W2 * Cout), lambda n: (n, 0, 0)),
        compiler_params=pltpu.CompilerParams(
            dimension_semantics=("parallel",),
            vmem_limit_bytes=32 * 1024 * 1024,
        ),
        cost_estimate=pl.CostEstimate(flops=flops, transcendentals=0,
                                      bytes_accessed=bytes_accessed),
    )(x1f, x2f, m1, uh, bupf, w1b, s1f, t1f, w2b, s2f, t2f)

    return out.reshape(N, H2, W2, Cout).transpose(0, 3, 1, 2)                 # back to NCHW


def reference_forward(x1_nchw, x2_nchw, params):
    """Pure-JAX (f32) reference with the same eval-mode semantics."""
    eps = 1e-5
    x1 = jnp.transpose(x1_nchw, (0, 2, 3, 1)).astype(jnp.float32)
    x2 = jnp.transpose(x2_nchw, (0, 2, 3, 1)).astype(jnp.float32)
    C2 = x2.shape[-1]
    C1 = x1.shape[-1]

    w_up = jnp.transpose(params["w_up"].reshape(C2, C1), (1, 0))
    a = jnp.einsum("nhwc,cd->nhwd", x1, w_up) + params["b_up"]

    def up2(x):  # bilinear, scale 2, align_corners=True
        n, h, w, c = x.shape
        ho, wo = 2 * h, 2 * w

        def idx(si, so):
            pos = jnp.arange(so) * (si - 1) / (so - 1)
            i0 = jnp.floor(pos).astype(jnp.int32)
            i1 = jnp.minimum(i0 + 1, si - 1)
            return i0, i1, (pos - i0).astype(jnp.float32)

        h0, h1, fh = idx(h, ho)
        w0, w1, fw = idx(w, wo)
        xh = x[:, h0] * (1 - fh)[None, :, None, None] + x[:, h1] * fh[None, :, None, None]
        return xh[:, :, w0] * (1 - fw)[None, None, :, None] + xh[:, :, w1] * fw[None, None, :, None]

    h = jnp.concatenate([x2, up2(a)], axis=-1)

    def block(h, w_oihw, b, gamma, beta, rm, rv):
        w = jnp.transpose(w_oihw, (2, 3, 1, 0))
        y = jax.lax.conv_general_dilated(h, w, (1, 1), "SAME",
                                         dimension_numbers=("NHWC", "HWIO", "NHWC")) + b
        y = gamma * (y - rm) / jnp.sqrt(rv + eps) + beta
        return jnp.maximum(y, 0.01 * y)

    h = block(h, params["w1"], params["b1"], params["gamma1"], params["beta1"],
              params["rm1"], params["rv1"])
    h = block(h, params["w2"], params["b2"], params["gamma2"], params["beta2"],
              params["rm2"], params["rv2"])
    return jnp.transpose(h, (0, 3, 1, 2))


if __name__ == "__main__":
    N, C1, C2, Cout = 2, 8, 4, 8          # in_channels1=8, in_channels2=4, out_channels=8
    H1 = W1 = 8
    H2, W2 = 2 * H1, 2 * W1

    key = jax.random.PRNGKey(0)
    ks = jax.random.split(key, 16)
    params = {
        "w_up": (1.0 / np.sqrt(C1)) * jax.random.normal(ks[0], (C2, C1, 1, 1), jnp.float32),
        "b_up": 0.1 * jax.random.normal(ks[1], (C2,), jnp.float32),
        "w1": 0.1 * jax.random.normal(ks[2], (Cout, 2 * C2, 3, 3), jnp.float32),
        "b1": 0.1 * jax.random.normal(ks[3], (Cout,), jnp.float32),
        "gamma1": 1.0 + 0.1 * jax.random.normal(ks[4], (Cout,), jnp.float32),
        "beta1": 0.1 * jax.random.normal(ks[5], (Cout,), jnp.float32),
        "rm1": 0.05 * jax.random.normal(ks[6], (Cout,), jnp.float32),
        "rv1": 1.0 + 0.1 * jax.random.uniform(ks[7], (Cout,), jnp.float32),
        "w2": 0.1 * jax.random.normal(ks[8], (Cout, Cout, 3, 3), jnp.float32),
        "b2": 0.1 * jax.random.normal(ks[9], (Cout,), jnp.float32),
        "gamma2": 1.0 + 0.1 * jax.random.normal(ks[10], (Cout,), jnp.float32),
        "beta2": 0.1 * jax.random.normal(ks[11], (Cout,), jnp.float32),
        "rm2": 0.05 * jax.random.normal(ks[12], (Cout,), jnp.float32),
        "rv2": 1.0 + 0.1 * jax.random.uniform(ks[13], (Cout,), jnp.float32),
    }
    x1 = jax.random.normal(ks[14], (N, C1, H1, W1), jnp.float32)
    x2 = jax.random.normal(ks[15], (N, C2, H2, W2), jnp.float32)

    out = jax.block_until_ready(up_block_forward(x1, x2, params))
    ref = jax.block_until_ready(reference_forward(x1, x2, params))

    assert out.shape == (N, Cout, H2, W2), out.shape
    # bf16 MXU operands with f32 accumulation vs pure-f32 reference -> 5e-2 tolerance
    np.testing.assert_allclose(np.asarray(out), np.asarray(ref), rtol=5e-2, atol=5e-2)
    print("KERNEL_OK")
</pallas_src>

<mosaic_0001>
module attributes {stable_mosaic.version = 11 : i64} {
  func.func @kernel(%arg0: i32, %arg1: memref<1x8x64xf32, #tpu.memory_space<vmem>>, %arg2: memref<1x16x64xf32, #tpu.memory_space<vmem>>, %arg3: memref<64x64xf32, #tpu.memory_space<vmem>>, %arg4: memref<16x8xf32, #tpu.memory_space<vmem>>, %arg5: memref<1x64xf32, #tpu.memory_space<vmem>>, %arg6: memref<384x128xbf16, #tpu.memory_space<vmem>>, %arg7: memref<1x128xf32, #tpu.memory_space<vmem>>, %arg8: memref<1x128xf32, #tpu.memory_space<vmem>>, %arg9: memref<384x128xbf16, #tpu.memory_space<vmem>>, %arg10: memref<1x128xf32, #tpu.memory_space<vmem>>, %arg11: memref<1x128xf32, #tpu.memory_space<vmem>>, %arg12: memref<1x16x128xf32, #tpu.memory_space<vmem>>) attributes {dimension_semantics = [#tpu.dimension_semantics<parallel>], iteration_bounds = array<i64: 2>, scalar_prefetch = 0 : i64, scratch_operands = 0 : i64, tpu.core_type = #tpu.core_type<tc>, window_params = [{transform_indices = @transform_0, window_bounds = array<i64: 1, 8, 64>}, {transform_indices = @transform_1, window_bounds = array<i64: 1, 16, 64>}, {pipeline_mode = #tpu.pipeline_mode<synchronous>, transform_indices = @transform_2, window_bounds = array<i64: 64, 64>}, {pipeline_mode = #tpu.pipeline_mode<synchronous>, transform_indices = @transform_3, window_bounds = array<i64: 16, 8>}, {pipeline_mode = #tpu.pipeline_mode<synchronous>, transform_indices = @transform_4, window_bounds = array<i64: 1, 64>}, {pipeline_mode = #tpu.pipeline_mode<synchronous>, transform_indices = @transform_5, window_bounds = array<i64: 384, 128>}, {pipeline_mode = #tpu.pipeline_mode<synchronous>, transform_indices = @transform_6, window_bounds = array<i64: 1, 128>}, {pipeline_mode = #tpu.pipeline_mode<synchronous>, transform_indices = @transform_7, window_bounds = array<i64: 1, 128>}, {pipeline_mode = #tpu.pipeline_mode<synchronous>, transform_indices = @transform_8, window_bounds = array<i64: 384, 128>}, {pipeline_mode = #tpu.pipeline_mode<synchronous>, transform_indices = @transform_9, window_bounds = array<i64: 1, 128>}, {pipeline_mode = #tpu.pipeline_mode<synchronous>, transform_indices = @transform_10, window_bounds = array<i64: 1, 128>}, {transform_indices = @transform_11, window_bounds = array<i64: 1, 16, 128>}]} {
    %c0 = arith.constant 0 : index
    %c0_0 = arith.constant 0 : index
    %c0_1 = arith.constant 0 : index
    %0 = vector.load %arg1[%c0, %c0_0, %c0_1] : memref<1x8x64xf32, #tpu.memory_space<vmem>>, vector<1x8x64xf32>
    %1 = vector.shape_cast %0 : vector<1x8x64xf32> to vector<8x64xf32>
    %c0_2 = arith.constant 0 : index
    %c0_3 = arith.constant 0 : index
    %2 = vector.load %arg3[%c0_2, %c0_3] : memref<64x64xf32, #tpu.memory_space<vmem>>, vector<64x64xf32>
    %cst = arith.constant dense<0.000000e+00> : vector<8x64xf32>
    %3 = tpu.matmul %1, %2, %cst {dimension_numbers = #tpu.dot_dimension_numbers<[1], [0], [0], [1], [0, 0, 1, 1], [], []>} : vector<8x64xf32>, vector<64x64xf32>, vector<8x64xf32> -> vector<8x64xf32>
    %c0_4 = arith.constant 0 : index
    %c0_5 = arith.constant 0 : index
    %4 = vector.load %arg4[%c0_4, %c0_5] : memref<16x8xf32, #tpu.memory_space<vmem>>, vector<16x8xf32>
    %cst_6 = arith.constant dense<0.000000e+00> : vector<16x64xf32>
    %5 = tpu.matmul %4, %3, %cst_6 {dimension_numbers = #tpu.dot_dimension_numbers<[1], [0], [0], [1], [0, 0, 1, 1], [], []>} : vector<16x8xf32>, vector<8x64xf32>, vector<16x64xf32> -> vector<16x64xf32>
    %c0_7 = arith.constant 0 : index
    %c0_8 = arith.constant 0 : index
    %6 = vector.load %arg5[%c0_7, %c0_8] : memref<1x64xf32, #tpu.memory_space<vmem>>, vector<1x64xf32>
    %7 = vector.broadcast %6 : vector<1x64xf32> to vector<16x64xf32>
    %8 = arith.addf %5, %7 : vector<16x64xf32>
    %c0_9 = arith.constant 0 : index
    %c0_10 = arith.constant 0 : index
    %c0_11 = arith.constant 0 : index
    %9 = vector.load %arg2[%c0_9, %c0_10, %c0_11] : memref<1x16x64xf32, #tpu.memory_space<vmem>>, vector<1x16x64xf32>
    %10 = vector.shape_cast %9 : vector<1x16x64xf32> to vector<16x64xf32>
    %11 = tpu.concatenate %10, %8 in 1 : vector<16x64xf32>, vector<16x64xf32> -> vector<16x128xf32>
    %cst_12 = arith.constant 0.000000e+00 : f32
    %12 = vector.broadcast %cst_12 : f32 to vector<1x128xf32>
    %13 = tpu.concatenate %12, %11, %12 in 0 : vector<1x128xf32>, vector<16x128xf32>, vector<1x128xf32> -> vector<18x128xf32>
    %14 = vector.extract_strided_slice %13 {offsets = [0, 0], sizes = [16, 128], strides = [1, 1]} : vector<18x128xf32> to vector<16x128xf32>
    %15 = vector.extract_strided_slice %13 {offsets = [1, 0], sizes = [16, 128], strides = [1, 1]} : vector<18x128xf32> to vector<16x128xf32>
    %16 = vector.extract_strided_slice %13 {offsets = [2, 0], sizes = [16, 128], strides = [1, 1]} : vector<18x128xf32> to vector<16x128xf32>
    %17 = tpu.concatenate %14, %15, %16 in 1 : vector<16x128xf32>, vector<16x128xf32>, vector<16x128xf32> -> vector<16x384xf32>
    %18 = arith.truncf %17 : vector<16x384xf32> to vector<16x384xbf16>
    %c0_13 = arith.constant 0 : index
    %c0_14 = arith.constant 0 : index
    %19 = vector.load %arg6[%c0_13, %c0_14] : memref<384x128xbf16, #tpu.memory_space<vmem>>, vector<384x128xbf16>
    %cst_15 = arith.constant dense<0.000000e+00> : vector<16x128xf32>
    %20 = tpu.matmul %18, %19, %cst_15 {dimension_numbers = #tpu.dot_dimension_numbers<[1], [0], [0], [1], [0, 0, 1, 1], [], []>} : vector<16x384xbf16>, vector<384x128xbf16>, vector<16x128xf32> -> vector<16x128xf32>
    %c0_16 = arith.constant 0 : index
    %c0_17 = arith.constant 0 : index
    %21 = vector.load %arg7[%c0_16, %c0_17] : memref<1x128xf32, #tpu.memory_space<vmem>>, vector<1x128xf32>
    %22 = vector.broadcast %21 : vector<1x128xf32> to vector<16x128xf32>
    %23 = arith.mulf %20, %22 : vector<16x128xf32>
    %c0_18 = arith.constant 0 : index
    %c0_19 = arith.constant 0 : index
    %24 = vector.load %arg8[%c0_18, %c0_19] : memref<1x128xf32, #tpu.memory_space<vmem>>, vector<1x128xf32>
    %25 = vector.broadcast %24 : vector<1x128xf32> to vector<16x128xf32>
    %26 = arith.addf %23, %25 : vector<16x128xf32>
    %cst_20 = arith.constant 0.00999999977 : f32
    %27 = vector.broadcast %cst_20 : f32 to vector<16x128xf32>
    %28 = arith.mulf %27, %26 : vector<16x128xf32>
    %29 = arith.maximumf %26, %28 : vector<16x128xf32>
    %cst_21 = arith.constant 0.000000e+00 : f32
    %30 = vector.broadcast %cst_21 : f32 to vector<1x128xf32>
    %31 = tpu.concatenate %30, %29, %30 in 0 : vector<1x128xf32>, vector<16x128xf32>, vector<1x128xf32> -> vector<18x128xf32>
    %32 = vector.extract_strided_slice %31 {offsets = [0, 0], sizes = [16, 128], strides = [1, 1]} : vector<18x128xf32> to vector<16x128xf32>
    %33 = vector.extract_strided_slice %31 {offsets = [1, 0], sizes = [16, 128], strides = [1, 1]} : vector<18x128xf32> to vector<16x128xf32>
    %34 = vector.extract_strided_slice %31 {offsets = [2, 0], sizes = [16, 128], strides = [1, 1]} : vector<18x128xf32> to vector<16x128xf32>
    %35 = tpu.concatenate %32, %33, %34 in 1 : vector<16x128xf32>, vector<16x128xf32>, vector<16x128xf32> -> vector<16x384xf32>
    %36 = arith.truncf %35 : vector<16x384xf32> to vector<16x384xbf16>
    %c0_22 = arith.constant 0 : index
    %c0_23 = arith.constant 0 : index
    %37 = vector.load %arg9[%c0_22, %c0_23] : memref<384x128xbf16, #tpu.memory_space<vmem>>, vector<384x128xbf16>
    %cst_24 = arith.constant dense<0.000000e+00> : vector<16x128xf32>
    %38 = tpu.matmul %36, %37, %cst_24 {dimension_numbers = #tpu.dot_dimension_numbers<[1], [0], [0], [1], [0, 0, 1, 1], [], []>} : vector<16x384xbf16>, vector<384x128xbf16>, vector<16x128xf32> -> vector<16x128xf32>
    %c0_25 = arith.constant 0 : index
    %c0_26 = arith.constant 0 : index
    %39 = vector.load %arg10[%c0_25, %c0_26] : memref<1x128xf32, #tpu.memory_space<vmem>>, vector<1x128xf32>
    %40 = vector.broadcast %39 : vector<1x128xf32> to vector<16x128xf32>
    %41 = arith.mulf %38, %40 : vector<16x128xf32>
    %c0_27 = arith.constant 0 : index
    %c0_28 = arith.constant 0 : index
    %42 = vector.load %arg11[%c0_27, %c0_28] : memref<1x128xf32, #tpu.memory_space<vmem>>, vector<1x128xf32>
    %43 = vector.broadcast %42 : vector<1x128xf32> to vector<16x128xf32>
    %44 = arith.addf %41, %43 : vector<16x128xf32>
    %cst_29 = arith.constant 0.00999999977 : f32
    %45 = vector.broadcast %cst_29 : f32 to vector<16x128xf32>
    %46 = arith.mulf %45, %44 : vector<16x128xf32>
    %47 = arith.maximumf %44, %46 : vector<16x128xf32>
    %c0_30 = arith.constant 0 : index
    %c0_31 = arith.constant 0 : index
    %c0_32 = arith.constant 0 : index
    %48 = vector.load %arg12[%c0_30, %c0_31, %c0_32] : memref<1x16x128xf32, #tpu.memory_space<vmem>>, vector<1x16x128xf32>
    %49 = vector.shape_cast %48 : vector<1x16x128xf32> to vector<16x128xf32>
    %50 = vector.shape_cast %47 : vector<16x128xf32> to vector<1x16x128xf32>
    tpu.vector_store %arg12[%c0_30, %c0_31, %c0_32], %50 {strides = array<i32>} : memref<1x16x128xf32, #tpu.memory_space<vmem>>, vector<1x16x128xf32>,
    return
  }
  func.func @transform_0(%arg0: i32) -> (i32, i32, i32) {
    %c0_i32 = arith.constant 0 : i32
    %c0_i32_0 = arith.constant 0 : i32
    %c0_i32_1 = arith.constant 0 : i32
    return %arg0, %c0_i32, %c0_i32_0 : i32, i32, i32
  }
  func.func @transform_1(%arg0: i32) -> (i32, i32, i32) {
    %c0_i32 = arith.constant 0 : i32
    %c0_i32_0 = arith.constant 0 : i32
    %c0_i32_1 = arith.constant 0 : i32
    return %arg0, %c0_i32, %c0_i32_0 : i32, i32, i32
  }
  func.func @transform_2(%arg0: i32) -> (i32, i32) {
    %c0_i32 = arith.constant 0 : i32
    %c0_i32_0 = arith.constant 0 : i32
    %c0_i32_1 = arith.constant 0 : i32
    return %c0_i32, %c0_i32_0 : i32, i32
  }
  func.func @transform_3(%arg0: i32) -> (i32, i32) {
    %c0_i32 = arith.constant 0 : i32
    %c0_i32_0 = arith.constant 0 : i32
    %c0_i32_1 = arith.constant 0 : i32
    return %c0_i32, %c0_i32_0 : i32, i32
  }
  func.func @transform_4(%arg0: i32) -> (i32, i32) {
    %c0_i32 = arith.constant 0 : i32
    %c0_i32_0 = arith.constant 0 : i32
    %c0_i32_1 = arith.constant 0 : i32
    return %c0_i32, %c0_i32_0 : i32, i32
  }
  func.func @transform_5(%arg0: i32) -> (i32, i32) {
    %c0_i32 = arith.constant 0 : i32
    %c0_i32_0 = arith.constant 0 : i32
    %c0_i32_1 = arith.constant 0 : i32
    return %c0_i32, %c0_i32_0 : i32, i32
  }
  func.func @transform_6(%arg0: i32) -> (i32, i32) {
    %c0_i32 = arith.constant 0 : i32
    %c0_i32_0 = arith.constant 0 : i32
    %c0_i32_1 = arith.constant 0 : i32
    return %c0_i32, %c0_i32_0 : i32, i32
  }
  func.func @transform_7(%arg0: i32) -> (i32, i32) {
    %c0_i32 = arith.constant 0 : i32
    %c0_i32_0 = arith.constant 0 : i32
    %c0_i32_1 = arith.constant 0 : i32
    return %c0_i32, %c0_i32_0 : i32, i32
  }
  func.func @transform_8(%arg0: i32) -> (i32, i32) {
    %c0_i32 = arith.constant 0 : i32
    %c0_i32_0 = arith.constant 0 : i32
    %c0_i32_1 = arith.constant 0 : i32
    return %c0_i32, %c0_i32_0 : i32, i32
  }
  func.func @transform_9(%arg0: i32) -> (i32, i32) {
    %c0_i32 = arith.constant 0 : i32
    %c0_i32_0 = arith.constant 0 : i32
    %c0_i32_1 = arith.constant 0 : i32
    return %c0_i32, %c0_i32_0 : i32, i32
  }
  func.func @transform_10(%arg0: i32) -> (i32, i32) {
    %c0_i32 = arith.constant 0 : i32
    %c0_i32_0 = arith.constant 0 : i32
    %c0_i32_1 = arith.constant 0 : i32
    return %c0_i32, %c0_i32_0 : i32, i32
  }
  func.func @transform_11(%arg0: i32) -> (i32, i32, i32) {
    %c0_i32 = arith.constant 0 : i32
    %c0_i32_0 = arith.constant 0 : i32
    %c0_i32_1 = arith.constant 0 : i32
    return %arg0, %c0_i32, %c0_i32_0 : i32, i32, i32
  }
}

</mosaic_0001>

<bundles_post_ra>
// kernel: tpu_custom_call.1
= control target key start
LH: loop header
LB: loop body
LE: loop exit
PB: predicated region body
PF: predicated region fallthrough
CT: control target
= control target key end

     0   :  { %s2108_s0 = inlined_call_operand.vmem [shape: f32[2,8,64], index: 0, kind: input, shape index: {}]   ;;  %s2109_s1 = inlined_call_operand.hbm [shape: f32[2,16,64], index: 1, kind: input, shape index: {}]   ;;  %s2110_s2 = inlined_call_operand.hbm [shape: f32[64,64], index: 2, kind: input, shape index: {}]   ;;  %s2111_s3 = inlined_call_operand.vmem [shape: f32[16,8], index: 3, kind: input, shape index: {}]   ;;  %s2112_s4 = inlined_call_operand.vmem [shape: f32[1,64], index: 4, kind: input, shape index: {}]   ;;  %s2113_s5 = inlined_call_operand.hbm [shape: bf16[384,128], index: 5, kind: input, shape index: {}]   ;;  %s2114_s6 = inlined_call_operand.vmem [shape: f32[1,128], index: 6, kind: input, shape index: {}]   ;;  %s2115_s7 = inlined_call_operand.vmem [shape: f32[1,128], index: 7, kind: input, shape index: {}]   ;;  %s2116_s8 = inlined_call_operand.hbm [shape: bf16[384,128], index: 8, kind: input, shape index: {}]   ;;  %s2117_s9 = inlined_call_operand.vmem [shape: f32[1,128], index: 9, kind: input, shape index: {}]   ;;  %s2118_s10 = inlined_call_operand.vmem [shape: f32[1,128], index: 10, kind: input, shape index: {}]   ;;  %s2119_s11 = inlined_call_operand.hbm [shape: f32[2,16,128], index: 11, kind: output, shape index: {}]  }
   0x1   :  { %2123 = sst [smem:[#allocation17_spill]] %s2110_s2 }
   0x2   :  { %2124 = sst [smem:[#allocation18_spill]] %s2113_s5 }
   0x3   :  { %2125 = sst [smem:[#allocation19_spill]] %s2116_s8 }
   0x4   :  { %16 = vsyncpa [#allocation3], 0 }
   0x5   :  { %18 = vsyncpa [#allocation3 + $0x1], 0 }
   0x6   :  { %19 = vsyncpa [#allocation6], 0 }
   0x7   :  { %20 = vsyncpa [#allocation9], 0 }
   0x8   :  { %21 = vsyncpa [#allocation4], 0 }
   0x9   :  { %23 = vsyncpa [#allocation4 + $0x1], 0  ;;  %s1884_s17 = smov 0   ;;  %s1886_s18 = smov 0  }
   0xa   :  { %s1888_s19 = smov 0   ;;  %s1890_s20 = smov 0  }
   0xb LB: > { %2126 = sst [smem:[#allocation15_spill]] %s1807_s19  ;;  %s1905_s21 = sadd.s32 4294967295, %s1811_s20   ;;  %s1811_s20 = sphi %s1890_s20, %s2146_s20   ;;  %s1807_s19 = sphi %s1888_s19, %s2143_s19   ;;  %s1803_s18 = sphi %s1886_s18, %s2145_s18   ;;  %s1799_s17 = sphi %s1884_s17, %s2144_s17  }
   0xc   : > { %s1248_s22 = sadd.s32 4294967294, %s1811_s20   ;;  %p75_p0 = scmp.ne.s32.totalorder %s1803_s18, %s1799_s17 }
   0xd   : > { %p76_p1 = scmp.eq.s32.totalorder %s1905_s21, 0  ;;  %p288_p2 = scmp.eq.s32.totalorder %s1905_s21, 1 }
   0xe   : > { %p294_p3 = scmp.eq.s32.totalorder %s1248_s22, 1  ;;  %p1249_p5 = scmp.ge.s32.totalorder %s1811_s20, 1 }
   0xf   : > { %p1914_p4 = por %p76_p1, %p75_p0  ;;  %p301_p7 = scmp.lt.s32.totalorder %s1811_s20, 3 }
  0x10   : > { %p1919_p6 = por %p294_p3, %p75_p0  ;;  %s2129_s2 = sld [smem:[#allocation17_spill]] }
  0x11   : > { %p1927_p8 = pnand %p1249_p5, %p301_p7  ;;  %s1813_s29 = smov [#allocation5]  }
  0x12   : > { %s314_s30 = sshll.u32 %s1813_s29, 4  ;;  %s2132_s5 = sld [smem:[#allocation18_spill]]  ;;  %s315_s30 = int_to_ptr.vmem [resolvable:$true] %s314_s30 }
  0x13   : > { %p1538_p9 = pneg %p1927_p8  ;;  %s2120_s16 = smov 128  }
  0x14   : > { %s2121_s22 = smov 8   ;;  %s1816_s25 = smov [#allocation7]  }
  0x15   : > { %p1935_p10 = pnand %p1538_p9, %p76_p1  ;;  %s334_s26 = sshll.u32 %s1816_s25, 4  ;;  %s335_s26 = int_to_ptr.vmem [resolvable:$true] %s334_s26 }
  0x16   : > { %s312_s27 = sshll.u32 %s2129_s2, 4  ;;  %s1817_s29 = smov 64   ;;  %s313_s27 = int_to_ptr.hbm [resolvable:$true] %s312_s27 }
  0x17   : > { %1541 = dma.hbm_to_vmem [thread:$0]  (!%p1935_p10), %s313_s27, 1024, %s315_s30, [#allocation6], %s2120_s16, %s2120_s16, %s2121_s22  }
  0x18   : > { %s332_s15 = sshll.u32 %s2132_s5, 4  ;;  %s1818_s13 = smov 4   ;;  %s333_s15 = int_to_ptr.hbm [resolvable:$true] %s332_s15 }
  0x19   : > { %1544 = dma.hbm_to_vmem [thread:$0]  (!%p1935_p10), %s333_s15, 3072, %s335_s26, [#allocation6], %s1817_s29, %s1817_s29, %s1818_s13  }
  0x1a   : > { %s2133_s8 = sld [smem:[#allocation19_spill]]  ;;  %s1819_s27 = smov [#allocation8]  }
  0x1b   : > { %s354_s30 = sshll.u32 %s1819_s27, 4  ;;  %s1956_s25 = sadd.s32 1, %s1811_s20   ;;  %s355_s30 = int_to_ptr.vmem [resolvable:$true] %s354_s30 }
  0x1c   : > { %s59_s16 = ssub.s32 %s1811_s20, %s1956_s25  ;;  %s62_s22 = sadd.s32 1, %s1807_s19 }
  0x1d   : > { %p60_p12 = scmp.eq.s32.totalorder %s59_s16, 0  ;;  %p69_p13 = scmp.ne.s32.totalorder %s1807_s19, %s1803_s18 }
  0x1e   : > { %p70_p0 = scmp.eq.s32.totalorder %s1811_s20, 0  ;;  %p1559_p5 = scmp.lt.s32.totalorder %s1811_s20, 2 }
  0x1f   : > { %s1965_s15 = scalar_select %p60_p12, %s1807_s19, %s62_s22  }
  0x20   : > { %s352_s5 = sshll.u32 %s2133_s8, 4  ;;  %p1969_p3 = por %p288_p2, %p69_p13  ;;  %s353_s5 = int_to_ptr.hbm [resolvable:$true] %s352_s5 }
  0x21   : > { %1547 = dma.hbm_to_vmem [thread:$0]  (!%p1935_p10), %s353_s5, 3072, %s355_s30, [#allocation9], %s1817_s29, %s1817_s29, %s1818_s13  }
  0x22   : > { %2134 = sst [smem:[#allocation16_spill]] %s1965_s15  ;;  %s381_s26 = sand.u32 1, %s1807_s19  }
  0x23   : > { %s1472_s14 = sshll.u32 %s1811_s20, 4  ;;  %p71_p7 = por %p70_p0, %p69_p13 }
  0x24   : > { %s1254_s5 = sshll.u32 %s381_s26, 4  ;;  %s390_s13 = scalar_lea.hbm %s2109_s1, %s1472_s14 }
  0x25   : > { %s391_s27 = sshll.u32 %s390_s13, 4  ;;  %s385_s16 = scalar_lea.vmem [#allocation2], %s1254_s5  ;;  %s392_s27 = int_to_ptr.hbm [resolvable:$true] %s391_s27 }
  0x26   : > { %s393_s30 = sshll.u32 %s385_s16, 4  ;;  %p1979_p9 = pnand %p1559_p5, %p71_p7  ;;  %s394_s30 = int_to_ptr.vmem [resolvable:$true] %s393_s30 }
  0x27   : > { %s382_s8 = scalar_lea.sflag [#allocation3], %s381_s26  ;;  %s1707_s15 = sshra.s32 %s392_s27, 4  ;;  %s1708_s15 = int_to_ptr.hbm [resolvable:$true] %s1707_s15 }
  0x28   : > { %s1709_s19 = scalar_lea.hbm %s1708_s15, 16  ;;  %p1711_p10 = pneg %p1979_p9 }
  0x29   : > { %p1710_p2 = scmp.ne.s32.totalorder %s1708_s15, %s1709_s19  ;;  %s1714_s5 = scalar_lea.hbm %s2109_s1, 32 }
  0x2a   : > { %p1715_p0 = scmp.lt.s32.totalorder %s1708_s15, %s2109_s1  ;;  %p1716_p5 = scmp.lt.s32.totalorder %s1714_s5, %s1709_s19 }
  0x2b   : > { %p1712_p12 = pnand %p1711_p10, %p1710_p2 }
  0x2c   : > { %p1717_p7 = por %p1716_p5, %p1715_p0 }
  0x2d   : > { %p1713_p13 = pneg %p1712_p12 }
  0x2f   : > { %p1718_p11 = pnand %p1717_p7, %p1713_p13 }
  0x31   : > { %1721 = shalt.err (!%p1718_p11)
}
  0x32   : > { %s2137_s26 = smov 8   ;;  %s2138_s16 = smov 128  }
  0x33   : > { %1551 = dma.hbm_to_vmem [thread:$0]  (!%p1979_p9), %s392_s27, 256, %s394_s30, %s382_s8, %s2138_s16, %s2138_s16, %s2137_s26  }
  0x34   : > { %405 = sbr.rel (%p1927_p8) target bundleno = 786 (0x312), region = 64  ;;  %s1999_s14 = sand.u32 (!%p1927_p8), 1, %s1803_s18  }
  0x35   : > { %s1258_s19 = sshll.u32 (!%p1927_p8), %s1999_s14, 4  ;;  %s408_s15 = scalar_lea.sflag (!%p1927_p8), [#allocation3], %s1999_s14 }
  0x36   : > { %s2005_s12 = scalar_lea.vmem (!%p1927_p8), [#allocation2], %s1258_s19 }
  0x39   : > { %1782 = dma.done.wait (%p1914_p4), %s408_s15, 256  }
  0x3a   : > { %1784 = vsyncadd (%p1914_p4), %s408_s15, 4294967040 }
  0x3b   : > { %1786 = dma.done.wait (%p76_p1), [#allocation6], 4096  }
  0x3c   : > { %1788 = vsyncadd (%p76_p1), [#allocation6], 4294963200 }
  0x3d   : > { %1790 = dma.done.wait (%p76_p1), [#allocation9], 3072  }
  0x3e   : > { %1792 = vsyncadd (%p76_p1), [#allocation9], 4294964224  ;;  %p470_p8 = scmp.lt.s32.totalorder %s1905_s21, 1  ;;  %v482_v0 = vld [vmem:[#allocation5 + $0x38] sm:$0xff]  ;;  %v481_v1 = vld [vmem:[#allocation5 + $0x30] sm:$0xff]  ;;  %vm483_vm0 = vcmask 523264  }
  0x3f   : > { %495 = vmatpush.msra.mxu0 %v482_v0  ;;  %v480_v2 = vld [vmem:[#allocation5 + $0x28] sm:$0xff]  ;;  %v479_v3 = vld [vmem:[#allocation5 + $0x20] sm:$0xff]  ;;  %v478_v4 = vld [vmem:[#allocation5 + $0x18] sm:$0xff]  ;;  %vm513_vm1 = vcmask 64512   ;;  %s1820_s15 = smov 64   ;;  %vm557_vm2 = vcmask 1040384  }
  0x40   : > { %s471_s8 = scalar_select %p470_p8, %s1905_s21, 1  ;;  %v477_v5 = vld [vmem:[#allocation5 + $0x10] sm:$0xff]  ;;  %v476_v6 = vld [vmem:[#allocation5 + $0x8] sm:$0xff]  ;;  %v475_v7 = vld [vmem:[#allocation5] sm:$0xff]  ;;  %vm568_vm4 = vcmask 1046528   ;;  %vm1821_vm5 = vmmov 1  }
  0x41   : > { %496 = vmatpush.msra.mxu0 %v481_v1  ;;  %v507_v9 = vld [vmem:[%s2111_s3] sm:$0xff]  ;;  %v508_v11 = vld [vmem:[%s2111_s3 + $0x8] sm:$0xff]  ;;  %v1480_v12 = vld [vmem:[#allocation7 + $0x38] sm:$0xff]  ;;  %vm576_vm7 = vcmask 1045504   ;;  %s1521_s29 = sshll.u32 %s1905_s21, 4  ;;  %s469_s13 = scalar_lea.vmem [#allocation10], %s1258_s19 }
  0x42   : > { %s1263_s23 = sshll.u32 %s471_s8, 3  ;;  %v1488_v13 = vld [vmem:[#allocation7 + $0x78] sm:$0xff]  ;;  %779 = vmatpush.bf16.msra.mxu2 %v1480_v12  ;;  %v1479_v15 = vld [vmem:[#allocation7 + $0x30] sm:$0xff]  ;;  %v1478_v18 = vld [vmem:[#allocation7 + $0x28] sm:$0xff]  ;;  %s1119_s21 = scalar_lea.sflag [#allocation4], %s1999_s14 }
  0x43   : > { %497 = vmatpush.msra.mxu0 %v480_v2  ;;  %s473_s30 = scalar_lea.vmem %s2108_s0, %s1263_s23  ;;  %v1496_v14 = vld [vmem:[#allocation7 + $0xb8] sm:$0xff]  ;;  %793 = vmatpush.bf16.msra.mxu3 %v1488_v13  ;;  %v1487_v16 = vld [vmem:[#allocation7 + $0x70] sm:$0xff]  ;;  %v1486_v19 = vld [vmem:[#allocation7 + $0x68] sm:$0xff] }
  0x44   : > { %v474_v8 = vld [vmem:[%s473_s30] sm:$0xff]  ;;  %v1495_v17 = vld [vmem:[#allocation7 + $0xb0] sm:$0xff]  ;;  %v1494_v20 = vld [vmem:[#allocation7 + $0xa8] sm:$0xff]  ;;  %s1757_s30 = scalar_lea.hbm %s2119_s11, 32 }
  0x45   : > { %498 = vmatpush.msra.mxu0 %v479_v3  ;;  %v1477_v21 = vld [vmem:[#allocation7 + $0x20] sm:$0xff]  ;;  %v1476_v24 = vld [vmem:[#allocation7 + $0x18] sm:$0xff]  ;;  %v1475_v27 = vld [vmem:[#allocation7 + $0x10] sm:$0xff] }
  0x46   : > { %780 = vmatpush.bf16.msra.mxu2 %v1479_v15  ;;  %v1485_v22 = vld [vmem:[#allocation7 + $0x60] sm:$0xff]  ;;  %v1484_v25 = vld [vmem:[#allocation7 + $0x58] sm:$0xff]  ;;  %v1483_v34 = vld [vmem:[#allocation7 + $0x50] sm:$0xff] }
  0x47   : > { %499 = vmatpush.msra.mxu0 %v478_v4  ;;  %794 = vmatpush.bf16.msra.mxu3 %v1487_v16  ;;  %v1493_v23 = vld [vmem:[#allocation7 + $0xa0] sm:$0xff]  ;;  %v1492_v26 = vld [vmem:[#allocation7 + $0x98] sm:$0xff]  ;;  %v1491_v35 = vld [vmem:[#allocation7 + $0x90] sm:$0xff] }
  0x48   : > { %v1612_v29 = vld [vmem:[%s2112_s4] ss:$0 sm:$0xff]  ;;  %v1474_v36 = vld [vmem:[#allocation7 + $0x8] sm:$0xff]  ;;  %vm1363_vm3 = vmneg %vm557_vm2 }
  0x49   : > { %500 = vmatpush.msra.mxu0 %v477_v5  ;;  %v1482_v37 = vld [vmem:[#allocation7 + $0x48] sm:$0xff]  ;;  %v1473_v39 = vld [vmem:[#allocation7] sm:$0xff]  ;;  %vm2041_vm6 = vmpackc.low %vm1821_vm5, %vm1363_vm3 }
  0x4a   : > { %781 = vmatpush.bf16.msra.mxu2 %v1478_v18  ;;  %v1490_v38 = vld [vmem:[#allocation7 + $0x88] sm:$0xff]  ;;  %v1481_v40 = vld [vmem:[#allocation7 + $0x40] sm:$0xff]  ;;  %v1504_v4 = vld [vmem:[#allocation8 + $0x38] sm:$0xff] }
  0x4b   : > { %501 = vmatpush.msra.mxu0 %v476_v6  ;;  %795 = vmatpush.bf16.msra.mxu3 %v1486_v19  ;;  %v1489_v41 = vld [vmem:[#allocation7 + $0x80] sm:$0xff]  ;;  %v544_v43 = vld [vmem:[%s2005_s12 + $0x8] sm:$0xff]  ;;  %v1499_v19 = vld [vmem:[#allocation8 + $0x10] sm:$0xff] }
  0x4c   : > { %v543_v42 = vld [vmem:[%s2005_s12] sm:$0xff]  ;;  %v1512_v5 = vld [vmem:[#allocation8 + $0x78] sm:$0xff]  ;;  %v1518_v12 = vld [vmem:[#allocation8 + $0xa8] sm:$0xff]  ;;  %s1131_s12 = sshll.u32 %s469_s13, 4  ;;  %s1132_s12 = int_to_ptr.vmem [resolvable:$true] %s1131_s12 }
  0x4d   : > { %502 = vmatpush.msra.mxu0 %v475_v7  ;;  %v1520_v6 = vld [vmem:[#allocation8 + $0xb8] sm:$0xff]  ;;  %v1503_v7 = vld [vmem:[#allocation8 + $0x30] sm:$0xff]  ;;  %v1501_v13 = vld [vmem:[#allocation8 + $0x20] sm:$0xff] }
  0x4e   : > { %1264 = vmatmul.msk.f32.vlgmr.msra.gmra.mxu0 %vm483_vm0, %v474_v8  ;;  %782 = vmatpush.bf16.msra.mxu2 %v1477_v21  ;;  %v1511_v8 = vld [vmem:[#allocation8 + $0x70] sm:$0xff]  ;;  %v1517_v15 = vld [vmem:[#allocation8 + $0xa0] sm:$0xff]  ;;  %v1500_v16 = vld [vmem:[#allocation8 + $0x18] sm:$0xff] }
  0x4f   : > { %796 = vmatpush.bf16.msra.mxu3 %v1485_v22  ;;  %1058 = vmatpush.bf16.msrb.mxu0 %v1504_v4  ;;  %v1516_v18 = vld [vmem:[#allocation8 + $0x98] sm:$0xff]  ;;  %v1515_v21 = vld [vmem:[#allocation8 + $0x90] sm:$0xff]  ;;  %v1498_v22 = vld [vmem:[#allocation8 + $0x8] sm:$0xff] }
  0x50   : > { %v1615_v53 = vld [vmem:[%s2117_s9] ss:$0 sm:$0xff] }
  0x52   : > { %783 = vmatpush.bf16.msra.mxu2 %v1476_v24  ;;  %v1514_v24 = vld [vmem:[#allocation8 + $0x88] sm:$0xff] }
  0x53   : > { %797 = vmatpush.bf16.msra.mxu3 %v1484_v25  ;;  %1059 = vmatpush.bf16.msrb.mxu0 %v1503_v7  ;;  %v1497_v25 = vld [vmem:[#allocation8] sm:$0xff] }
  0x56   : > { %784 = vmatpush.bf16.msra.mxu2 %v1475_v27  ;;  %v1513_v27 = vld [vmem:[#allocation8 + $0x80] sm:$0xff] }
  0x57   : > { %798 = vmatpush.bf16.msra.mxu3 %v1483_v34  ;;  %v1614_v34 = vld [vmem:[%s2115_s7] ss:$0 sm:$0xff] }
  0x5a   : > { %785 = vmatpush.bf16.msra.mxu2 %v1474_v36 }
  0x5b   : > { %799 = vmatpush.bf16.msra.mxu3 %v1482_v37 }
  0x5e   : > { %786 = vmatpush.bf16.msra.mxu2 %v1473_v39 }
  0x5f   : > { %800 = vmatpush.bf16.msra.mxu3 %v1481_v40 }
  0x62   : > { %1072 = vmatpush.bf16.msrb.mxu2 %v1512_v5 }
  0x63   : > { %1086 = vmatpush.bf16.msrb.mxu3 %v1520_v6 }
  0x66   : > { %1073 = vmatpush.bf16.msrb.mxu2 %v1511_v8  ;;  %v1616_v8 = vld [vmem:[%s2118_s10] ss:$0 sm:$0xff] }
  0xcb   : > { %v504_v10 = vpop.f32.mrf.mxu0 }
  0xcc   : > { %535 = vmatpush.msra.mxu1 %v504_v10  ;;  %v1502_v10 = vld [vmem:[#allocation8 + $0x28] sm:$0xff] }
  0xcd   : > { %1265 = vmatmul.msk.f32.vlgmr.msra.gmra.mxu1 %vm513_vm1, %v507_v9  ;;  %v1519_v9 = vld [vmem:[#allocation8 + $0xb0] sm:$0xff]  ;;  %1060 = vmatpush.bf16.msrb.mxu0 %v1502_v10 }
  0xce   : > { %807 = vmatpush.bf16.msrb.mxu1 %v1496_v14  ;;  %1087 = vmatpush.bf16.msrb.mxu3 %v1519_v9  ;;  %v1509_v14 = vld [vmem:[#allocation8 + $0x60] sm:$0xff] }
  0xd1   : > { %1061 = vmatpush.bf16.msrb.mxu0 %v1501_v13 }
  0xd2   : > { %808 = vmatpush.bf16.msrb.mxu1 %v1495_v17  ;;  %1088 = vmatpush.bf16.msrb.mxu3 %v1518_v12  ;;  %v1508_v17 = vld [vmem:[#allocation8 + $0x58] sm:$0xff] }
  0xd5   : > { %1266 = vmatmul.msk.f32.gmra.mxu1 %vm513_vm1, %v508_v11  ;;  %v1510_v11 = vld [vmem:[#allocation8 + $0x68] sm:$0xff]  ;;  %1062 = vmatpush.bf16.msrb.mxu0 %v1500_v16 }
  0xd6   : > { %809 = vmatpush.bf16.msrb.mxu1 %v1494_v20  ;;  %1074 = vmatpush.bf16.msrb.mxu2 %v1510_v11  ;;  %v1507_v20 = vld [vmem:[#allocation8 + $0x50] sm:$0xff] }
  0xd7   : > { %1089 = vmatpush.bf16.msrb.mxu3 %v1517_v15 }
  0xd9   : > { %1063 = vmatpush.bf16.msrb.mxu0 %v1499_v19 }
  0xda   : > { %810 = vmatpush.bf16.msrb.mxu1 %v1493_v23  ;;  %1075 = vmatpush.bf16.msrb.mxu2 %v1509_v14  ;;  %v1506_v23 = vld [vmem:[#allocation8 + $0x48] sm:$0xff] }
  0xdb   : > { %1090 = vmatpush.bf16.msrb.mxu3 %v1516_v18 }
  0xdd   : > { %1064 = vmatpush.bf16.msrb.mxu0 %v1498_v22 }
  0xde   : > { %811 = vmatpush.bf16.msrb.mxu1 %v1492_v26  ;;  %1076 = vmatpush.bf16.msrb.mxu2 %v1508_v17  ;;  %v1505_v26 = vld [vmem:[#allocation8 + $0x40] sm:$0xff] }
  0xdf   : > { %1091 = vmatpush.bf16.msrb.mxu3 %v1515_v21 }
  0xe1   : > { %1065 = vmatpush.bf16.msrb.mxu0 %v1497_v25 }
  0xe2   : > { %812 = vmatpush.bf16.msrb.mxu1 %v1491_v35  ;;  %1077 = vmatpush.bf16.msrb.mxu2 %v1507_v20 }
  0xe3   : > { %1092 = vmatpush.bf16.msrb.mxu3 %v1514_v24 }
  0xe6   : > { %813 = vmatpush.bf16.msrb.mxu1 %v1490_v38  ;;  %1078 = vmatpush.bf16.msrb.mxu2 %v1506_v23 }
  0xe7   : > { %1093 = vmatpush.bf16.msrb.mxu3 %v1513_v27 }
  0xea   : > { %814 = vmatpush.bf16.msrb.mxu1 %v1489_v41  ;;  %1079 = vmatpush.bf16.msrb.mxu2 %v1505_v26 }
 0x14a   : > { %v537_v28 = vpop.f32.mrf.mxu1 }
 0x14b   : > { %v538_v31 = vadd.f32 %v1612_v29, %v537_v28 }
 0x152   : > { %v540_v30 = vpop.f32.mrf.mxu1 }
 0x153   : > { %v541_v32 = vadd.f32 %v1612_v29, %v540_v30 }
 0x155   : > { %v1607_v33 = vpack.i.bf16 %v541_v32, %v538_v31  ;;  %v1613_v32 = vld [vmem:[%s2114_s6] ss:$0 sm:$0xff] }
 0x157   : > { %1608 = vrot.lane.b32.xlu0 %v1607_v33, %s1820_s15  ;;  %s1130_s15 = scalar_lea.hbm %s2119_s11, %s1521_s29 }
 0x158   : > { %s1133_s8 = sshll.u32 %s1130_s15, 4  ;;  %s1134_s8 = int_to_ptr.hbm [resolvable:$true] %s1133_s8 }
 0x159   : > { %s1751_s23 = sshra.s32 %s1134_s8, 4  ;;  %s1752_s23 = int_to_ptr.hbm [resolvable:$true] %s1751_s23 }
 0x15a   : > { %s1753_s28 = scalar_lea.hbm %s1752_s23, 16  ;;  %p1758_p9 = scmp.lt.s32.totalorder %s1752_s23, %s2119_s11 }
 0x15b   : > { %p1754_p1 = scmp.ne.s32.totalorder %s1752_s23, %s1753_s28  ;;  %p1759_p2 = scmp.lt.s32.totalorder %s1757_s30, %s1753_s28 }
 0x15d   : > { %p1755_p4 = pnand %p1754_p1, %p1969_p3  ;;  %p1760_p10 = por %p1759_p2, %p1758_p9 }
 0x15f   : > { %p1756_p11 = pneg %p1755_p4 }
 0x161   : > { %p1761_p12 = pnand %p1760_p10, %p1756_p11 }
 0x1c9   : > { %v1609_v44 = vpop.permute.xlu0 %1608 }
 0x1ca   : > { %v1611_v45 = vunpack.i.h.bf16 %v1609_v44  ;;  %v1610_v46 = vunpack.i.l.bf16 %v1609_v44 }
 0x1cc   : > { %v554_v47 = vsel %vm483_vm0, %v544_v43, %v1611_v45  ;;  %v553_v48 = vsel %vm483_vm0, %v543_v42, %v1610_v46 }
 0x1cd   : > { %v559_v49 = vrot.slane %v554_v47, 7  ;;  %v558_v50 = vrot.slane %v553_v48, 7 }
 0x1cf   : > { %v565_v51 = vsel %vm557_vm2, %v559_v49, 0.0  ;;  %v560_v52 = vsel %vm557_vm2, %v558_v50, %v559_v49  ;;  %v564_v54 = vsel %vm557_vm2, 0.0, %v558_v50 }
 0x1d0   : > { %v580_v55 = vrot.slane %v565_v51, 2  ;;  %v578_v56 = vrot.slane %v560_v52, 2  ;;  %v1365_v57 = vpack.c.bf16 %v560_v52, %v558_v50  ;;  %v569_v58 = vrot.slane %v564_v54, 1 }
 0x1d1   : > { %v570_v59 = vrot.slane %v560_v52, 1  ;;  %v572_v60 = vrot.slane %v565_v51, 1  ;;  %v577_v61 = vrot.slane %v564_v54, 2 }
 0x1d2   : > { %1366 = vmatmul.msk.bf16.vlgmr.msra.gmra.mxu2 %vm2041_vm6, %v1365_v57  ;;  %v581_v62 = vsel %vm576_vm7, %v578_v56, %v580_v55 }
 0x1d3   : > { %v571_v63 = vsel %vm568_vm4, %v569_v58, %v570_v59  ;;  %v573_v0 = vsel %vm568_vm4, %v570_v59, %v572_v60  ;;  %v579_v1 = vsel %vm576_vm7, %v577_v61, %v578_v56 }
 0x1d4   : > { %v585_v2 = vpack.c.bf16 %v573_v0, %v571_v63  ;;  %v586_v3 = vpack.c.bf16 %v581_v62, %v579_v1 }
 0x1d6   : > { %801 = vmatmul.bf16.vlgmr.msra.gmra.mxu3 %v585_v2  ;;  %815 = vmatmul.bf16.vlgmr.msrb.gmra.mxu1 %v586_v3 }
 0x253   : > { %v816_v29 = vpop.f32.mrf.mxu1 }
 0x255   : > { %v788_v28 = vpop.f32.mrf.mxu2 }
 0x259   : > { %v802_v30 = vpop.f32.mrf.mxu3 }
 0x25a   : > { %v803_v31 = vadd.f32 %v802_v30, %v788_v28 }
 0x25b   : > { %v818_v41 = vpop.f32.mrf.mxu1 }
 0x25c   : > { %v817_v33 = vadd.f32 %v816_v29, %v803_v31 }
 0x25d   : > { %v790_v37 = vpop.f32.mrf.mxu2 }
 0x25e   : > { %v825_v35 = vmul.f32 %v1613_v32, %v817_v33 }
 0x260   : > { %v831_v36 = vadd.f32 %v1614_v34, %v825_v35 }
 0x261   : > { %v804_v38 = vpop.f32.mrf.mxu3 }
 0x262   : > { %v833_v39 = vmul.f32 0.01, %v831_v36  ;;  %v805_v40 = vadd.f32 %v804_v38, %v790_v37 }
 0x264   : > { %v819_v42 = vadd.f32 %v818_v41, %v805_v40  ;;  %v835_v43 = vmax.f32 %v831_v36, %v833_v39 }
 0x266   : > { %v826_v44 = vmul.f32 %v1613_v32, %v819_v42  ;;  %v839_v46 = vrot.slane %v835_v43, 7 }
 0x268   : > { %v832_v45 = vadd.f32 %v1614_v34, %v826_v44  ;;  %v845_v49 = vsel %vm557_vm2, 0.0, %v839_v46 }
 0x269   : > { %v849_v54 = vrot.slane %v845_v49, 1  ;;  %v856_v55 = vrot.slane %v845_v49, 2 }
 0x26a   : > { %v834_v47 = vmul.f32 0.01, %v832_v45 }
 0x26c   : > { %v836_v48 = vmax.f32 %v832_v45, %v834_v47 }
 0x26e   : > { %v840_v50 = vrot.slane %v836_v48, 7 }
 0x270   : > { %v841_v51 = vsel %vm557_vm2, %v839_v46, %v840_v50  ;;  %v846_v52 = vsel %vm557_vm2, %v840_v50, 0.0 }
 0x271   : > { %v1465_v56 = vpack.c.bf16 %v841_v51, %v839_v46  ;;  %v850_v57 = vrot.slane %v841_v51, 1  ;;  %v852_v58 = vrot.slane %v846_v52, 1  ;;  %v857_v59 = vrot.slane %v841_v51, 2 }
 0x272   : > { %v859_v60 = vrot.slane %v846_v52, 2 }
 0x273   : > { %1466 = vmatmul.msk.bf16.vlgmr.msrb.gmra.mxu0 %vm2041_vm6, %v1465_v56  ;;  %v851_v61 = vsel %vm568_vm4, %v849_v54, %v850_v57  ;;  %v853_v62 = vsel %vm568_vm4, %v850_v57, %v852_v58  ;;  %v858_v63 = vsel %vm576_vm7, %v856_v55, %v857_v59 }
 0x274   : > { %v864_v0 = vpack.c.bf16 %v853_v62, %v851_v61  ;;  %v860_v1 = vsel %vm576_vm7, %v857_v59, %v859_v60 }
 0x275   : > { %v865_v2 = vpack.c.bf16 %v860_v1, %v858_v63 }
 0x276   : > { %1080 = vmatmul.bf16.vlgmr.msrb.gmra.mxu2 %v864_v0 }
 0x277   : > { %1094 = vmatmul.bf16.vlgmr.msrb.gmra.mxu3 %v865_v2 }
 0x2f0   : > { %v1067_v3 = vpop.f32.mrf.mxu0 }
 0x2f8   : > { %v1069_v11 = vpop.f32.mrf.mxu0 }
 0x2f9   : > { %v1081_v4 = vpop.f32.mrf.mxu2 }
 0x2fa   : > { %v1082_v5 = vadd.f32 %v1081_v4, %v1067_v3  ;;  %v1095_v6 = vpop.f32.mrf.mxu3 }
 0x2fc   : > { %v1096_v7 = vadd.f32 %v1095_v6, %v1082_v5 }
 0x2fe   : > { %v1104_v9 = vmul.f32 %v1615_v53, %v1096_v7 }
 0x300   : > { %v1110_v10 = vadd.f32 %v1616_v8, %v1104_v9 }
 0x301   : > { %v1083_v12 = vpop.f32.mrf.mxu2 }
 0x302   : > { %v1112_v13 = vmul.f32 0.01, %v1110_v10  ;;  %v1084_v14 = vadd.f32 %v1083_v12, %v1069_v11  ;;  %v1097_v15 = vpop.f32.mrf.mxu3 }
 0x304   : > { %v1114_v16 = vmax.f32 %v1110_v10, %v1112_v13  ;;  %v1098_v17 = vadd.f32 %v1097_v15, %v1084_v14 }
 0x306   : > { %1116 = vst [vmem:[%s469_s13] sm:$0xff] %v1114_v16  ;;  %v1105_v18 = vmul.f32 %v1615_v53, %v1098_v17 }
 0x308   : > { %v1111_v19 = vadd.f32 %v1616_v8, %v1105_v18 }
 0x30a   : > { %v1113_v20 = vmul.f32 0.01, %v1111_v19 }
 0x30c   : > { %v1115_v21 = vmax.f32 %v1111_v19, %v1113_v20 }
 0x30e   : > { %1117 = vst [vmem:[%s469_s13 + $0x8] sm:$0xff] %v1115_v21 }
 0x30f   : > { %1764 = shalt.err (!%p1761_p12)
}
 0x310   : > { %s1822_s14 = smov 128   ;;  %s1823_s29 = smov 8  }
 0x311   : > { %1536 = dma.vmem_to_hbm [thread:$0]  (%p1969_p3), %s1132_s12, 256, %s1134_s8, %s1119_s21, %s1822_s14, %s1822_s14, %s1823_s29  }
 0x312 PF: > { %s1148_s13 = sand.u32 1, %s1799_s17   ;;  %p2141_p13 = scmp.ge.s32.totalorder %s1811_s20, 2 }
 0x313   : > { %s1149_s26 = scalar_lea.sflag [#allocation4], %s1148_s13 }
 0x314   : > { %p1553_p0 = pnand %p2141_p13, %p1919_p6 }
 0x316   : > { %p1554_p5 = pneg %p1553_p0 }
 0x318   : > { %1794 = dma.done.wait (%p1554_p5), %s1149_s26, 256  }
 0x319   : > { %1796 = vsyncadd (%p1554_p5), %s1149_s26, 4294967040  ;;  %s2142_s16 = sld [smem:[#allocation15_spill]]  ;;  %p26_p7 = scmp.ge.s32.totalorder %s1956_s25, 4  }
 0x31a   : > { %s2143_s19 = sld [smem:[#allocation16_spill]]  ;;  %s2144_s17 = smov %s1803_s18 }
 0x31b   : > { %s2146_s20 = smov %s1956_s25  ;;  %28 = sbr.rel (!%p26_p7) target bundleno = 11 (0xb), region = 124 }
 0x31f   : > { %s2145_s18 = smov %s2142_s16 }
 0x320   :  { %1155 = vsyncpa [#allocation3], 1 }
 0x321   :  { %1157 = vsyncpa [#allocation3 + $0x1], 1 }
 0x322   :  { %1158 = vsyncpa [#allocation6], 1 }
 0x323   :  { %1159 = vsyncpa [#allocation9], 1 }
 0x324   :  { %1160 = vsyncpa [#allocation4], 1 }
 0x325   :  { %1162 = vsyncpa [#allocation4 + $0x1], 1 }

</bundles_post_ra>
